<compile_context>
chip_gen: v5e
topology: v5e:2x2
jax: 0.10.0
libtpu: 0.0.40
codegen_flags: <defaults>
</compile_context>

<pallas_src>
import functools

import numpy as np
import jax
import jax.numpy as jnp
from jax.experimental import pallas as pl
from jax.experimental.pallas import tpu as pltpu


# Compute dtype fed to the MXU. Set to jnp.bfloat16 to double MXU throughput
# and halve VMEM/HBM traffic on v5e/v6e/v7x (accumulation stays f32 via
# preferred_element_type). Kept at f32 by default to match the f32 PyTorch
# reference numerics.
MXU_DTYPE = jnp.float32


def _pick_tile(dim, target, align):
    """Largest tile <= target that is a multiple of `align` and divides `dim`;
    falls back to the full dim (full-dim blocks are always layout-legal)."""
    if dim <= target:
        return dim
    t = (target // align) * align
    while t >= align:
        if dim % t == 0:
            return t
        t -= align
    return dim


def _gelu_exact(x):
    # Exact-erf GELU (PyTorch nn.GELU default). erf via Abramowitz-Stegun
    # 7.1.26 (max abs err ~1.5e-7, i.e. at f32 round-off); uses only
    # mul/add/exp so it lowers in Mosaic and the exp lands on the EUP slot,
    # which is idle while the MXU is busy.
    # TODO(synk): switch to jax.lax.erf once an erf lowering is guaranteed in Mosaic.
    z = x * np.float32(0.7071067811865476)
    az = jnp.abs(z)
    t = 1.0 / (1.0 + np.float32(0.3275911) * az)
    poly = ((((np.float32(1.061405429) * t + np.float32(-1.453152027)) * t
              + np.float32(1.421413741)) * t + np.float32(-0.284496736)) * t
            + np.float32(0.254829592)) * t
    erf_az = 1.0 - poly * jnp.exp(-az * az)
    erf_z = jnp.where(z >= 0, erf_az, -erf_az)
    return 0.5 * x * (1.0 + erf_z)


# ----------------------- tiled linear (K reduction) -------------------------

def _linear_kernel(x_ref, w_ref, b_ref, *rest, gelu, has_res):
    if has_res:
        res_ref, o_ref, acc_ref = rest
    else:
        o_ref, acc_ref = rest
    k = pl.program_id(2)

    @pl.when(k == 0)
    def _():
        acc_ref[...] = jnp.zeros_like(acc_ref)

    acc_ref[...] += jnp.dot(x_ref[...].astype(MXU_DTYPE),
                            w_ref[...].astype(MXU_DTYPE),
                            preferred_element_type=jnp.float32)

    @pl.when(k == pl.num_programs(2) - 1)
    def _():
        out = acc_ref[...] + b_ref[...]
        if gelu:
            out = _gelu_exact(out)
        if has_res:
            out = out + res_ref[...]
        o_ref[...] = out.astype(o_ref.dtype)


def linear(x, w, b, *, residual=None, gelu=False,
           tm_target=256, tn_target=512, tk_target=256):
    """(M,K)@(K,N)+b [+gelu] [+residual] -> (M,N), tiled & pipelined."""
    M, K = x.shape
    N = w.shape[1]
    tm = _pick_tile(M, tm_target, 8)
    tn = _pick_tile(N, tn_target, 128)
    tk = _pick_tile(K, tk_target, 128)
    has_res = residual is not None

    in_specs = [
        pl.BlockSpec((tm, tk), lambda i, j, k: (i, k)),
        pl.BlockSpec((tk, tn), lambda i, j, k: (k, j)),
        pl.BlockSpec((1, tn), lambda i, j, k: (0, j)),
    ]
    args = [x, w, b.reshape(1, N)]
    if has_res:
        in_specs.append(pl.BlockSpec((tm, tn), lambda i, j, k: (i, j)))
        args.append(residual)

    cost = pl.CostEstimate(
        flops=2 * M * N * K + (M * N if has_res else 0),
        transcendentals=(M * N if gelu else 0),
        bytes_accessed=4 * (M * K + K * N + M * N + N
                            + (M * N if has_res else 0)))

    return pl.pallas_call(
        functools.partial(_linear_kernel, gelu=gelu, has_res=has_res),
        out_shape=jax.ShapeDtypeStruct((M, N), jnp.float32),
        grid=(M // tm, N // tn, K // tk),
        in_specs=in_specs,
        out_specs=pl.BlockSpec((tm, tn), lambda i, j, k: (i, j)),
        scratch_shapes=[pltpu.VMEM((tm, tn), jnp.float32)],
        compiler_params=pltpu.CompilerParams(
            dimension_semantics=("parallel", "parallel", "arbitrary")),
        cost_estimate=cost,
    )(*args)


# -------------------- fused LayerNorm -> matmul (full K) --------------------

def _ln_linear_kernel(x_ref, g_ref, bt_ref, w_ref, b_ref, *rest,
                      eps, gelu, has_res):
    if has_res:
        res_ref, o_ref = rest
    else:
        (o_ref,) = rest
    x = x_ref[...]                                    # (tm, K) f32
    mu = jnp.mean(x, axis=-1, keepdims=True)
    xc = x - mu
    var = jnp.mean(xc * xc, axis=-1, keepdims=True)
    h = xc * jax.lax.rsqrt(var + eps) * g_ref[...] + bt_ref[...]
    out = jnp.dot(h.astype(MXU_DTYPE), w_ref[...].astype(MXU_DTYPE),
                  preferred_element_type=jnp.float32) + b_ref[...]
    if gelu:
        out = _gelu_exact(out)
    if has_res:
        out = out + res_ref[...]
    o_ref[...] = out.astype(o_ref.dtype)


def ln_linear(x, gamma, beta, w, b, *, residual=None, gelu=False, eps=1e-5,
              tm_target=256, tn_target=512):
    """LayerNorm(x) @ w + b [+gelu] [+residual]; LN needs full K per row block."""
    M, K = x.shape
    N = w.shape[1]
    tm = _pick_tile(M, tm_target, 8)
    tn = _pick_tile(N, tn_target, 128)
    has_res = residual is not None

    in_specs = [
        pl.BlockSpec((tm, K), lambda i, j: (i, 0)),
        pl.BlockSpec((1, K), lambda i, j: (0, 0)),
        pl.BlockSpec((1, K), lambda i, j: (0, 0)),
        pl.BlockSpec((K, tn), lambda i, j: (0, j)),
        pl.BlockSpec((1, tn), lambda i, j: (0, j)),
    ]
    args = [x, gamma.reshape(1, K), beta.reshape(1, K), w, b.reshape(1, N)]
    if has_res:
        in_specs.append(pl.BlockSpec((tm, tn), lambda i, j: (i, j)))
        args.append(residual)

    cost = pl.CostEstimate(
        flops=2 * M * N * K + 8 * M * K + (M * N if has_res else 0),
        transcendentals=M + (M * N if gelu else 0),
        bytes_accessed=4 * (M * K + K * N + M * N + 2 * K + N
                            + (M * N if has_res else 0)))

    return pl.pallas_call(
        functools.partial(_ln_linear_kernel, eps=eps, gelu=gelu,
                          has_res=has_res),
        out_shape=jax.ShapeDtypeStruct((M, N), jnp.float32),
        grid=(M // tm, N // tn),
        in_specs=in_specs,
        out_specs=pl.BlockSpec((tm, tn), lambda i, j: (i, j)),
        compiler_params=pltpu.CompilerParams(
            dimension_semantics=("parallel", "parallel")),
        cost_estimate=cost,
    )(*args)


# -------------------------- standalone LayerNorm ----------------------------

def _layernorm_kernel(x_ref, g_ref, b_ref, o_ref, *, eps):
    x = x_ref[...]
    mu = jnp.mean(x, axis=-1, keepdims=True)
    xc = x - mu
    var = jnp.mean(xc * xc, axis=-1, keepdims=True)
    o_ref[...] = xc * jax.lax.rsqrt(var + eps) * g_ref[...] + b_ref[...]


def layernorm(x, g, b, eps=1e-5, tm_target=512):
    shp = x.shape
    D = shp[-1]
    x2 = x.reshape(-1, D)
    M = x2.shape[0]
    tm = _pick_tile(M, tm_target, 8)
    out = pl.pallas_call(
        functools.partial(_layernorm_kernel, eps=eps),
        out_shape=jax.ShapeDtypeStruct((M, D), jnp.float32),
        grid=(M // tm,),
        in_specs=[
            pl.BlockSpec((tm, D), lambda i: (i, 0)),
            pl.BlockSpec((1, D), lambda i: (0, 0)),
            pl.BlockSpec((1, D), lambda i: (0, 0)),
        ],
        out_specs=pl.BlockSpec((tm, D), lambda i: (i, 0)),
        compiler_params=pltpu.CompilerParams(dimension_semantics=("parallel",)),
    )(x2, g.reshape(1, D), b.reshape(1, D))
    return out.reshape(shp)


# ------------------------ lane-dense multi-head attention -------------------

def _attn_kernel(q_ref, k_ref, v_ref, o_ref, *, num_heads, scale):
    # q/k/v blocks are (1, S, D) with heads packed along lanes (D = H*Dh).
    q = q_ref[0]
    k = k_ref[0]
    v = v_ref[0]
    S, D = q.shape
    Dh = D // num_heads
    outs = []
    for h in range(num_heads):             # static unrolled head loop
        lo = h * Dh
        qh = q[:, lo:lo + Dh].astype(MXU_DTYPE)
        kh = k[:, lo:lo + Dh].astype(MXU_DTYPE)
        vh = v[:, lo:lo + Dh].astype(MXU_DTYPE)
        s = jax.lax.dot_general(
            qh, kh, (((1,), (1,)), ((), ())),
            preferred_element_type=jnp.float32) * scale
        s = s - jnp.max(s, axis=-1, keepdims=True)
        p = jnp.exp(s)
        p = p * pl.reciprocal(jnp.sum(p, axis=-1, keepdims=True), approx=True)
        outs.append(jnp.dot(p.astype(MXU_DTYPE), vh,
                            preferred_element_type=jnp.float32))
    # Output stays head-major along lanes: (S, H*Dh) == timm's transpose(1,2).reshape.
    o_ref[0] = jnp.concatenate(outs, axis=-1)


def attention(q, k, v, num_heads):
    """q,k,v: (B, S, D) lane-dense; one batch element (all heads) per grid step."""
    # TODO(synk): switch to online-softmax (flash) tiling over KV when S grows
    # beyond a few hundred tokens (full (S,S) scores would blow the VMEM tile).
    B, S, D = q.shape
    Dh = D // num_heads
    scale = float(Dh) ** -0.5
    cost = pl.CostEstimate(
        flops=4 * B * S * S * D,
        transcendentals=B * num_heads * S * S,
        bytes_accessed=4 * 4 * B * S * D)
    return pl.pallas_call(
        functools.partial(_attn_kernel, num_heads=num_heads, scale=scale),
        out_shape=jax.ShapeDtypeStruct((B, S, D), jnp.float32),
        grid=(B,),
        in_specs=[pl.BlockSpec((1, S, D), lambda i: (i, 0, 0))] * 3,
        out_specs=pl.BlockSpec((1, S, D), lambda i: (i, 0, 0)),
        compiler_params=pltpu.CompilerParams(dimension_semantics=("parallel",)),
        cost_estimate=cost,
    )(q, k, v)


# -------------------- 2D sincos positional embedding (host) ----------------

def _1d_sincos(embed_dim, pos):
    omega = np.arange(embed_dim // 2, dtype=np.float32) / (embed_dim / 2.0)
    omega = 1.0 / (10000.0 ** omega)
    pos = pos.reshape(-1)
    out = np.einsum("m,d->md", pos, omega)
    return np.concatenate([np.sin(out), np.cos(out)], axis=1)


def get_2d_sincos_pos_embed(embed_dim, grid_size, cls_token=False):
    grid_h = np.arange(grid_size, dtype=np.float32)
    grid_w = np.arange(grid_size, dtype=np.float32)
    grid = np.meshgrid(grid_w, grid_h)            # w first, as in the MAE reference
    grid = np.stack(grid, axis=0).reshape(2, 1, grid_size, grid_size)
    emb_h = _1d_sincos(embed_dim // 2, grid[0])
    emb_w = _1d_sincos(embed_dim // 2, grid[1])
    pos = np.concatenate([emb_h, emb_w], axis=1)
    if cls_token:
        pos = np.concatenate([np.zeros((1, embed_dim), np.float32), pos], axis=0)
    return pos.astype(np.float32)


# ------------------------------ parameters ---------------------------------

def init_params(key, *, img_size, img_channel, patch_size, embed_dim, depth,
                num_heads, mlp_ratio):
    hidden = int(embed_dim * mlp_ratio)
    keys = jax.random.split(key, 3 + depth)

    def w_init(k, shape):
        return (0.02 * jax.random.normal(k, shape)).astype(jnp.float32)

    params = {
        "patch_size": patch_size,
        "embed_dim": embed_dim,
        "num_heads": num_heads,
        "pos_embed": jnp.asarray(
            get_2d_sincos_pos_embed(embed_dim, img_size // patch_size, cls_token=True)
        )[None],                                                   # (1, L+1, D)
        "cls_token": (0.02 * jax.random.truncated_normal(
            keys[0], -2.0, 2.0, (1, 1, embed_dim))).astype(jnp.float32),
        "patch_w": w_init(keys[1], (img_channel * patch_size * patch_size, embed_dim)),
        "patch_b": jnp.zeros((embed_dim,), jnp.float32),
        "norm_g": jnp.ones((embed_dim,), jnp.float32),
        "norm_b": jnp.zeros((embed_dim,), jnp.float32),
        "blocks": [],
    }
    for d in range(depth):
        bk = jax.random.split(keys[3 + d], 4)
        params["blocks"].append({
            "ln1_g": jnp.ones((embed_dim,), jnp.float32),
            "ln1_b": jnp.zeros((embed_dim,), jnp.float32),
            "qkv_w": w_init(bk[0], (embed_dim, 3 * embed_dim)),
            "qkv_b": jnp.zeros((3 * embed_dim,), jnp.float32),
            "proj_w": w_init(bk[1], (embed_dim, embed_dim)),
            "proj_b": jnp.zeros((embed_dim,), jnp.float32),
            "ln2_g": jnp.ones((embed_dim,), jnp.float32),
            "ln2_b": jnp.zeros((embed_dim,), jnp.float32),
            "fc1_w": w_init(bk[2], (embed_dim, hidden)),
            "fc1_b": jnp.zeros((hidden,), jnp.float32),
            "fc2_w": w_init(bk[3], (hidden, embed_dim)),
            "fc2_b": jnp.zeros((embed_dim,), jnp.float32),
        })
    return params


# ------------------------------ forward pass --------------------------------

def vit_block(x, bp, num_heads):
    """timm Block: x = x + proj(attn(LN1(x))); x = x + fc2(gelu(fc1(LN2(x))))."""
    B, S, D = x.shape
    x2 = x.reshape(B * S, D)

    # Attention branch: fused LN1 -> qkv; lane-dense per-batch attention;
    # fused proj + residual.
    qkv = ln_linear(x2, bp["ln1_g"], bp["ln1_b"], bp["qkv_w"], bp["qkv_b"])
    qkv = qkv.reshape(B, S, 3 * D)
    # timm packs the 3D output axis as (3, H, Dh): q/k/v are contiguous D-wide
    # lane slices and heads stay packed along lanes — no head-major transpose.
    q = qkv[..., :D]
    k = qkv[..., D:2 * D]
    v = qkv[..., 2 * D:]
    o = attention(q, k, v, num_heads).reshape(B * S, D)
    x2 = linear(o, bp["proj_w"], bp["proj_b"], residual=x2)

    # MLP branch: fused LN2 -> fc1 -> exact GELU, then fc2 + residual.
    h1 = ln_linear(x2, bp["ln2_g"], bp["ln2_b"], bp["fc1_w"], bp["fc1_b"],
                   gelu=True)
    x2 = linear(h1, bp["fc2_w"], bp["fc2_b"], residual=x2)
    return x2.reshape(B, S, D)


def random_tube_masking(x, mask_ratio, t, key):
    # Gather/argsort-based masking stays in XLA (no clean Pallas equivalent).
    N, L, _ = x.shape
    len_keep = int(L * (1 - mask_ratio))
    B = N // t
    assert B * t == N
    noise = jax.random.uniform(key, (B, L), dtype=jnp.float32)
    if mask_ratio == 0.0:
        noise = jnp.sort(noise, axis=1)
    noise = jnp.repeat(noise, t, axis=0)                  # repeat_interleave(dim=0)
    ids_shuffle = jnp.argsort(noise, axis=1)
    ids_restore = jnp.argsort(ids_shuffle, axis=1)
    ids_keep = ids_shuffle[:, :len_keep]
    x_masked = jnp.take_along_axis(x, ids_keep[:, :, None], axis=1)
    mask = jnp.concatenate(
        [jnp.zeros((N, len_keep), jnp.float32),
         jnp.ones((N, L - len_keep), jnp.float32)], axis=1)
    mask = jnp.take_along_axis(mask, ids_restore, axis=1)
    return x_masked, mask, ids_restore


def encoder_forward(params, x, mask_ratio, t, noise_key):
    # x: (N, C, H, W), NCHW as in PyTorch.
    N, C, H, W = x.shape
    p = params["patch_size"]
    D = params["embed_dim"]
    gh, gw = H // p, W // p
    L = gh * gw

    # PatchEmbed (Conv2d k=p, s=p, output_fmt='NCL' then permute) == patchify + matmul.
    patches = (x.reshape(N, C, gh, p, gw, p)
                 .transpose(0, 2, 4, 1, 3, 5)
                 .reshape(N * L, C * p * p))
    tok = linear(patches, params["patch_w"], params["patch_b"]).reshape(N, L, D)

    tok = tok + params["pos_embed"][:, 1:, :]
    x_masked, mask, ids_restore = random_tube_masking(tok, mask_ratio, t, noise_key)

    cls = params["cls_token"] + params["pos_embed"][:, :1, :]     # (1, 1, D)
    cls = jnp.repeat(cls, N, axis=0)                              # repeat_interleave(dim=0)
    h = jnp.concatenate([cls, x_masked], axis=1)                  # (N, 1+len_keep, D)

    for bp in params["blocks"]:
        h = vit_block(h, bp, params["num_heads"])
    # nn.LayerNorm default eps=1e-5, matching the spec's `self.norm`.
    h = layernorm(h, params["norm_g"], params["norm_b"])
    return h, mask, ids_restore


# ----------------------------------- main -----------------------------------

if __name__ == "__main__":
    img_size, img_channel, patch_size = 16, 4, 4
    embed_dim, depth, num_heads, mlp_ratio = 32, 2, 4, 4.0
    batch, t, mask_ratio = 2, 2, 0.5

    root = jax.random.PRNGKey(0)
    k_param, k_x, k_noise = jax.random.split(root, 3)
    params = init_params(k_param, img_size=img_size, img_channel=img_channel,
                         patch_size=patch_size, embed_dim=embed_dim, depth=depth,
                         num_heads=num_heads, mlp_ratio=mlp_ratio)
    x = jax.random.normal(k_x, (batch, img_channel, img_size, img_size), jnp.float32)

    out, mask, ids_restore = encoder_forward(params, x, mask_ratio, t, k_noise)
    jax.block_until_ready((out, mask, ids_restore))

    L = (img_size // patch_size) ** 2
    len_keep = int(L * (1 - mask_ratio))
    assert out.shape == (batch, 1 + len_keep, embed_dim)
    assert mask.shape == (batch, L)
    assert ids_restore.shape == (batch, L)
    assert bool(jnp.all(jnp.isfinite(out)))
    print("KERNEL_OK")
</pallas_src>

<mosaic_0001>
module attributes {stable_mosaic.version = 11 : i64} {
  func.func @_linear_kernel(%arg0: i32, %arg1: i32, %arg2: i32, %arg3: memref<32x64xf32, #tpu.memory_space<vmem>>, %arg4: memref<64x32xf32, #tpu.memory_space<vmem>>, %arg5: memref<1x32xf32, #tpu.memory_space<vmem>>, %arg6: memref<32x32xf32, #tpu.memory_space<vmem>>, %arg7: memref<32x32xf32, #tpu.memory_space<vmem>>) attributes {dimension_semantics = [#tpu.dimension_semantics<parallel>, #tpu.dimension_semantics<parallel>, #tpu.dimension_semantics<arbitrary>], iteration_bounds = array<i64: 1, 1, 1>, scalar_prefetch = 0 : i64, scratch_operands = 1 : i64, tpu.core_type = #tpu.core_type<tc>, window_params = [{transform_indices = @transform_0, window_bounds = array<i64: 32, 64>}, {transform_indices = @transform_1, window_bounds = array<i64: 64, 32>}, {transform_indices = @transform_2, window_bounds = array<i64: 1, 32>}, {transform_indices = @transform_3, window_bounds = array<i64: 32, 32>}]} {
    %c0_i32 = arith.constant 0 : i32
    %0 = arith.cmpi eq, %arg2, %c0_i32 : i32
    %1 = arith.extui %0 : i1 to i32
    %c0_i32_0 = arith.constant 0 : i32
    %2 = arith.cmpi ne, %1, %c0_i32_0 : i32
    scf.if %2 {
      %cst_10 = arith.constant 0.000000e+00 : f32
      %12 = vector.broadcast %cst_10 : f32 to vector<32x32xf32>
      %c0_11 = arith.constant 0 : index
      %c0_12 = arith.constant 0 : index
      %13 = vector.load %arg7[%c0_11, %c0_12] : memref<32x32xf32, #tpu.memory_space<vmem>>, vector<32x32xf32>
      tpu.vector_store %arg7[%c0_11, %c0_12], %12 {strides = array<i32>} : memref<32x32xf32, #tpu.memory_space<vmem>>, vector<32x32xf32>,
    } else {
    }
    %c0 = arith.constant 0 : index
    %c0_1 = arith.constant 0 : index
    %3 = vector.load %arg7[%c0, %c0_1] : memref<32x32xf32, #tpu.memory_space<vmem>>, vector<32x32xf32>
    %c0_2 = arith.constant 0 : index
    %c0_3 = arith.constant 0 : index
    %4 = vector.load %arg3[%c0_2, %c0_3] : memref<32x64xf32, #tpu.memory_space<vmem>>, vector<32x64xf32>
    %c0_4 = arith.constant 0 : index
    %c0_5 = arith.constant 0 : index
    %5 = vector.load %arg4[%c0_4, %c0_5] : memref<64x32xf32, #tpu.memory_space<vmem>>, vector<64x32xf32>
    %cst = arith.constant dense<0.000000e+00> : vector<32x32xf32>
    %6 = tpu.matmul %4, %5, %cst {dimension_numbers = #tpu.dot_dimension_numbers<[1], [0], [0], [1], [0, 0, 1, 1], [], []>} : vector<32x64xf32>, vector<64x32xf32>, vector<32x32xf32> -> vector<32x32xf32>
    %7 = arith.addf %3, %6 : vector<32x32xf32>
    %c0_6 = arith.constant 0 : index
    %c0_7 = arith.constant 0 : index
    %8 = vector.load %arg7[%c0_6, %c0_7] : memref<32x32xf32, #tpu.memory_space<vmem>>, vector<32x32xf32>
    tpu.vector_store %arg7[%c0_6, %c0_7], %7 {strides = array<i32>} : memref<32x32xf32, #tpu.memory_space<vmem>>, vector<32x32xf32>,
    %c0_i32_8 = arith.constant 0 : i32
    %9 = arith.cmpi eq, %arg2, %c0_i32_8 : i32
    %10 = arith.extui %9 : i1 to i32
    %c0_i32_9 = arith.constant 0 : i32
    %11 = arith.cmpi ne, %10, %c0_i32_9 : i32
    scf.if %11 {
      %c0_10 = arith.constant 0 : index
      %c0_11 = arith.constant 0 : index
      %12 = vector.load %arg7[%c0_10, %c0_11] : memref<32x32xf32, #tpu.memory_space<vmem>>, vector<32x32xf32>
      %c0_12 = arith.constant 0 : index
      %c0_13 = arith.constant 0 : index
      %13 = vector.load %arg5[%c0_12, %c0_13] : memref<1x32xf32, #tpu.memory_space<vmem>>, vector<1x32xf32>
      %14 = vector.broadcast %13 : vector<1x32xf32> to vector<32x32xf32>
      %15 = arith.addf %12, %14 : vector<32x32xf32>
      %c0_14 = arith.constant 0 : index
      %c0_15 = arith.constant 0 : index
      %16 = vector.load %arg6[%c0_14, %c0_15] : memref<32x32xf32, #tpu.memory_space<vmem>>, vector<32x32xf32>
      tpu.vector_store %arg6[%c0_14, %c0_15], %15 {strides = array<i32>} : memref<32x32xf32, #tpu.memory_space<vmem>>, vector<32x32xf32>,
    } else {
    }
    return
  }
  func.func @transform_0(%arg0: i32, %arg1: i32, %arg2: i32) -> (i32, i32) {
    %c0_i32 = arith.constant 0 : i32
    return %arg0, %arg2 : i32, i32
  }
  func.func @transform_1(%arg0: i32, %arg1: i32, %arg2: i32) -> (i32, i32) {
    %c0_i32 = arith.constant 0 : i32
    return %arg2, %arg1 : i32, i32
  }
  func.func @transform_2(%arg0: i32, %arg1: i32, %arg2: i32) -> (i32, i32) {
    %c0_i32 = arith.constant 0 : i32
    %c0_i32_0 = arith.constant 0 : i32
    return %c0_i32, %arg1 : i32, i32
  }
  func.func @transform_3(%arg0: i32, %arg1: i32, %arg2: i32) -> (i32, i32) {
    %c0_i32 = arith.constant 0 : i32
    return %arg0, %arg1 : i32, i32
  }
}

</mosaic_0001>

<bundles_post_ra>
// kernel: tpu_custom_call.1
= control target key start
LH: loop header
LB: loop body
LE: loop exit
PB: predicated region body
PF: predicated region fallthrough
CT: control target
= control target key end

     0   :  { %vm19_vm0 = vcmask 261120   ;;  %v187_v2 = vmov 0.0   ;;  %s265_s0 = inlined_call_operand.vmem [shape: f32[32,64], index: 0, kind: input, shape index: {}]   ;;  %s266_s1 = inlined_call_operand.vmem [shape: f32[64,32], index: 1, kind: input, shape index: {}]   ;;  %s267_s2 = inlined_call_operand.vmem [shape: f32[1,32], index: 2, kind: input, shape index: {}]   ;;  %s268_s3 = inlined_call_operand.hbm [shape: f32[32,32], index: 3, kind: output, shape index: {}]  }
   0x1   :  { %v39_v0 = vld [vmem:[%s266_s1 + $0x38] sm:$0xff]  ;;  %v38_v1 = vld [vmem:[%s266_s1 + $0x30] sm:$0xff]  ;;  %20 = vst.msk [vmem:[#allocation2] sm:$0xff] %vm19_vm0, %v187_v2  ;;  %v37_v3 = vld [vmem:[%s266_s1 + $0x28] sm:$0xff] }
   0x2   :  { %133 = vmatpush.msra.mxu2 %v39_v0  ;;  %134 = vmatpush.msra.mxu3 %v39_v0  ;;  %21 = vst.msk [vmem:[#allocation2 + $0x8] sm:$0xff] %vm19_vm0, %v187_v2  ;;  %v36_v4 = vld [vmem:[%s266_s1 + $0x20] sm:$0xff] }
   0x3   :  { %61 = vmatpush.msra.mxu0 %v39_v0  ;;  %132 = vmatpush.msra.mxu1 %v39_v0  ;;  %22 = vst.msk [vmem:[#allocation2 + $0x10] sm:$0xff] %vm19_vm0, %v187_v2 }
   0x4   :  { %136 = vmatpush.msra.mxu2 %v38_v1  ;;  %137 = vmatpush.msra.mxu3 %v38_v1  ;;  %23 = vst.msk [vmem:[#allocation2 + $0x18] sm:$0xff] %vm19_vm0, %v187_v2 }
   0x5   :  { %62 = vmatpush.msra.mxu0 %v38_v1  ;;  %135 = vmatpush.msra.mxu1 %v38_v1 }
   0x6   :  { %8 = vsyncpa [#allocation4], 0  ;;  %139 = vmatpush.msra.mxu2 %v37_v3  ;;  %140 = vmatpush.msra.mxu3 %v37_v3  ;;  %v35_v5 = vld [vmem:[%s266_s1 + $0x18] sm:$0xff]  ;;  %v34_v6 = vld [vmem:[%s266_s1 + $0x10] sm:$0xff]  ;;  %vm40_vm1 = vcmask 523264   ;;  %s188_s9 = smov [#allocation3]  }
   0x7   :  { %63 = vmatpush.msra.mxu0 %v37_v3  ;;  %138 = vmatpush.msra.mxu1 %v37_v3  ;;  %v33_v7 = vld [vmem:[%s266_s1 + $0x8] sm:$0xff]  ;;  %v32_v8 = vld [vmem:[%s266_s1] sm:$0xff]  ;;  %v30_v9 = vld [vmem:[%s265_s0 + $0x10] sm:$0xff]  ;;  %s114_s10 = sshll.u32 %s188_s9, 4  ;;  %s116_s13 = sshll.u32 %s268_s3, 4  ;;  %s115_s10 = int_to_ptr.vmem [resolvable:$true] %s114_s10  ;;  %s117_s13 = int_to_ptr.hbm [resolvable:$true] %s116_s13 }
   0x8   :  { %142 = vmatpush.msra.mxu2 %v36_v4  ;;  %143 = vmatpush.msra.mxu3 %v36_v4  ;;  %v31_v10 = vld [vmem:[%s265_s0 + $0x18] sm:$0xff]  ;;  %v28_v11 = vld [vmem:[%s265_s0] sm:$0xff]  ;;  %v29_v12 = vld [vmem:[%s265_s0 + $0x8] sm:$0xff]  ;;  %s190_s14 = smov 8  }
   0x9   :  { %64 = vmatpush.msra.mxu0 %v36_v4  ;;  %141 = vmatpush.msra.mxu1 %v36_v4  ;;  %v24_v13 = vld [vmem:[#allocation2] sm:$0xff]  ;;  %v25_v14 = vld [vmem:[#allocation2 + $0x8] sm:$0xff] }
   0xa   :  { %145 = vmatpush.msra.mxu2 %v35_v5  ;;  %146 = vmatpush.msra.mxu3 %v35_v5  ;;  %v26_v19 = vld [vmem:[#allocation2 + $0x10] sm:$0xff]  ;;  %v160_v25 = vld [vmem:[%s267_s2] ss:$0 sm:$0xff]  ;;  %s189_s2 = smov 128  }
   0xb   :  { %65 = vmatpush.msra.mxu0 %v35_v5  ;;  %144 = vmatpush.msra.mxu1 %v35_v5  ;;  %v27_v20 = vld [vmem:[#allocation2 + $0x18] sm:$0xff] }
   0xc   :  { %148 = vmatpush.msra.mxu2 %v34_v6  ;;  %149 = vmatpush.msra.mxu3 %v34_v6 }
   0xd   :  { %66 = vmatpush.msra.mxu0 %v34_v6  ;;  %147 = vmatpush.msra.mxu1 %v34_v6 }
   0xe   :  { %151 = vmatpush.msra.mxu2 %v33_v7  ;;  %152 = vmatpush.msra.mxu3 %v33_v7 }
   0xf   :  { %67 = vmatpush.msra.mxu0 %v33_v7  ;;  %150 = vmatpush.msra.mxu1 %v33_v7 }
  0x10   :  { %154 = vmatpush.msra.mxu2 %v32_v8  ;;  %155 = vmatpush.msra.mxu3 %v32_v8 }
  0x11   :  { %130 = vmatmul.msk.f32.vlgmr.msra.gmra.mxu2 %vm40_vm1, %v30_v9  ;;  %131 = vmatmul.msk.f32.vlgmr.msra.gmra.mxu3 %vm40_vm1, %v31_v10 }
  0x12   :  { %68 = vmatpush.msra.mxu0 %v32_v8  ;;  %153 = vmatpush.msra.mxu1 %v32_v8 }
  0x13   :  { %128 = vmatmul.msk.f32.vlgmr.msra.gmra.mxu0 %vm40_vm1, %v28_v11  ;;  %129 = vmatmul.msk.f32.vlgmr.msra.gmra.mxu1 %vm40_vm1, %v29_v12 }
  0x90   :  { %v70_v15 = vpop.f32.mrf.mxu0  ;;  %v73_v16 = vpop.f32.mrf.mxu1 }
  0x91   :  { %v82_v17 = vadd.f32 %v70_v15, %v24_v13  ;;  %v83_v18 = vadd.f32 %v73_v16, %v25_v14 }
  0x93   :  { %87 = vst.msk [vmem:[#allocation2] sm:$0xff] %vm19_vm0, %v82_v17 }
  0x94   :  { %88 = vst.msk [vmem:[#allocation2 + $0x8] sm:$0xff] %vm19_vm0, %v83_v18  ;;  %v76_v21 = vpop.f32.mrf.mxu2  ;;  %v79_v22 = vpop.f32.mrf.mxu3 }
  0x95   :  { %v84_v23 = vadd.f32 %v76_v21, %v26_v19  ;;  %v85_v24 = vadd.f32 %v79_v22, %v27_v20 }
  0x97   :  { %89 = vst.msk [vmem:[#allocation2 + $0x10] sm:$0xff] %vm19_vm0, %v84_v23 }
  0x98   :  { %90 = vst.msk [vmem:[#allocation2 + $0x18] sm:$0xff] %vm19_vm0, %v85_v24 }
  0x9a   :  { %v94_v26 = vld [vmem:[#allocation2] sm:$0xff] }
  0x9b   :  { %v95_v27 = vld [vmem:[#allocation2 + $0x8] sm:$0xff]  ;;  %v102_v28 = vadd.f32 %v160_v25, %v94_v26 }
  0x9c   :  { %v103_v29 = vadd.f32 %v160_v25, %v95_v27 }
  0x9d   :  { %106 = vst.msk [vmem:[#allocation3] sm:$0xff] %vm19_vm0, %v102_v28 }
  0x9e   :  { %v96_v30 = vld [vmem:[#allocation2 + $0x10] sm:$0xff]  ;;  %107 = vst.msk [vmem:[#allocation3 + $0x8] sm:$0xff] %vm19_vm0, %v103_v29 }
  0x9f   :  { %v97_v31 = vld [vmem:[#allocation2 + $0x18] sm:$0xff]  ;;  %v104_v32 = vadd.f32 %v160_v25, %v96_v30 }
  0xa0   :  { %v105_v33 = vadd.f32 %v160_v25, %v97_v31 }
  0xa1   :  { %108 = vst.msk [vmem:[#allocation3 + $0x10] sm:$0xff] %vm19_vm0, %v104_v32 }
  0xa2   :  { %109 = vst.msk [vmem:[#allocation3 + $0x18] sm:$0xff] %vm19_vm0, %v105_v33 }
  0xa3   :  { %122 = dma.vmem_to_hbm [thread:$0]  %s115_s10, 512, %s117_s13, [#allocation4], %s189_s2, %s189_s2, %s190_s14  }
  0xa4   :  { %185 = dma.done.wait [#allocation4], 512  }
  0xa5   :  { %186 = vsyncadd [#allocation4], 4294966784 }
  0xa6   :  { %127 = vsyncpa [#allocation4], 1 }

</bundles_post_ra>
